<compile_context>
chip_gen: v7x
topology: tpu7x:2x2x1
jax: 0.10.0
libtpu: 0.0.40
codegen_flags: <defaults>
</compile_context>

<pallas_src>
import jax
import jax.numpy as jnp
from jax import lax
from jax.experimental import pallas as pl
from jax.experimental.pallas import tpu as pltpu

EPS = 1e-5
LANES = 128
TM_TARGET = 4096   # spatial tile length (lane dim); ~4.6 MiB/step VMEM incl. double buffering
NPAR = 2           # per-image spatial split -> both TensorCores on v7x; harmless on v5e/v6e


def _round_up(x, m):
    return (x + m - 1) // m * m


def _cdiv(a, b):
    return (a + b - 1) // b


# ---------------- pass 1: conv (MXU matmul) + per-channel sum / sum-of-squares ----------------
def _conv_stats_kernel(w_ref, p_ref, y_ref, sum_ref, ssq_ref):
    # w_ref: (c_out, K_pad) bf16 (resident), p_ref: (K_pad, TM) bf16, y_ref: (c_out, TM) f32
    y = jnp.dot(w_ref[...], p_ref[...], preferred_element_type=jnp.float32)
    y_ref[...] = y  # already NCHW-flat and lane-dense: no transpose needed anywhere

    @pl.when(pl.program_id(2) == 0)
    def _():
        sum_ref[...] = jnp.zeros_like(sum_ref)
        ssq_ref[...] = jnp.zeros_like(ssq_ref)

    # TODO(synk): for extreme |mean|/std ratios the single-pass E[y^2]-E[y]^2 can cancel;
    # switch to a centered / Welford-style per-tile combination if layer-0 stats demand it.
    sum_ref[...] += jnp.sum(y, axis=1, keepdims=True)
    ssq_ref[...] += jnp.sum(y * y, axis=1, keepdims=True)


# ---------------- pass 2: fused BatchNorm (scale/shift) + ReLU ----------------
def _bn_relu_kernel(y_ref, scale_ref, shift_ref, o_ref):
    o_ref[...] = jnp.maximum(
        y_ref[...] * scale_ref[...] + shift_ref[...], 0.0
    ).astype(o_ref.dtype)


def resnet_layer0_4band(x, weight, gamma, beta):
    """x: (N, C_in, H, W) f32. weight: (C_out, C_in, 7, 7). Returns (N, C_out, H_out, W_out)."""
    n, c_in, h, w = x.shape
    c_out = weight.shape[0]
    kh = kw = 7
    stride, pad = 2, 3
    h_out = (h + 2 * pad - kh) // stride + 1
    w_out = (w + 2 * pad - kw) // stride + 1
    howo = h_out * w_out
    k = c_in * kh * kw

    # --- alignment / tiling ---
    k_pad = _round_up(k, LANES)                      # aligned MXU contraction (196 -> 256)
    n_sp = _round_up(max(NPAR, _cdiv(howo, TM_TARGET)), NPAR)
    tm = _round_up(_cdiv(howo, n_sp), LANES)         # lane-dense spatial tile (multiple of 128)
    p_pad = tm * n_sp
    n_sp_h = n_sp // NPAR

    # --- host-side patch extraction, K-major (exactly the layout pass 1 consumes) ---
    # conv_general_dilated_patches orders K channel-major ((c_in, kh, kw) flattened), which
    # matches weight.reshape(c_out, c_in*kh*kw).  bf16 halves the patch matrix's HBM traffic;
    # accumulation stays f32 on the MXU.  Padded K rows / spatial columns are zero, so they
    # contribute nothing to the matmul or the BN statistics (we divide by the real count).
    # TODO(synk): fully fuse the im2col into pass 1 (manual DMA of 7-row input strips + on-chip
    # patch assembly) to remove the remaining ~12x patch-matrix inflation and this pad pass.
    patches = lax.conv_general_dilated_patches(
        x.astype(jnp.bfloat16), filter_shape=(kh, kw), window_strides=(stride, stride),
        padding=((pad, pad), (pad, pad)),
        dimension_numbers=("NCHW", "OIHW", "NCHW"))              # (n, k, h_out, w_out)
    patches = patches.reshape(n, k, howo)
    patches = jnp.pad(patches, ((0, 0), (0, k_pad - k), (0, p_pad - howo)))

    w_flat = jnp.pad(weight.reshape(c_out, k).astype(jnp.bfloat16), ((0, 0), (0, k_pad - k)))

    # ----- pass 1: conv + per-image / per-split channel sum & sumsq -----
    y, sums, ssqs = pl.pallas_call(
        _conv_stats_kernel,
        out_shape=(
            jax.ShapeDtypeStruct((n, c_out, p_pad), jnp.float32),    # only the 16 real channels
            jax.ShapeDtypeStruct((n, NPAR, c_out, 1), jnp.float32),
            jax.ShapeDtypeStruct((n, NPAR, c_out, 1), jnp.float32),
        ),
        grid=(n, NPAR, n_sp_h),
        in_specs=[
            pl.BlockSpec((c_out, k_pad), lambda b, c, i: (0, 0)),                       # resident
            pl.BlockSpec((None, k_pad, tm), lambda b, c, i: (b, 0, c * n_sp_h + i)),
        ],
        out_specs=(
            pl.BlockSpec((None, c_out, tm), lambda b, c, i: (b, 0, c * n_sp_h + i)),
            pl.BlockSpec((None, None, c_out, 1), lambda b, c, i: (b, c, 0, 0)),  # resident acc
            pl.BlockSpec((None, None, c_out, 1), lambda b, c, i: (b, c, 0, 0)),  # resident acc
        ),
        compiler_params=pltpu.CompilerParams(
            dimension_semantics=("parallel", "parallel", "arbitrary")),
    )(w_flat, patches)

    # ----- tiny per-channel BN math (train-mode batch stats, biased variance) -----
    m_real = n * howo
    s = jnp.sum(sums, axis=(0, 1, 3))
    sq = jnp.sum(ssqs, axis=(0, 1, 3))
    mean = s / m_real
    var = jnp.maximum(sq / m_real - mean * mean, 0.0)
    inv = lax.rsqrt(var + EPS)
    scale = (gamma.astype(jnp.float32) * inv).reshape(c_out, 1)
    shift = (beta.astype(jnp.float32) - mean * scale[:, 0]).reshape(c_out, 1)

    # ----- pass 2: normalize + ReLU, fully parallel, output already NCHW-flat -----
    out = pl.pallas_call(
        _bn_relu_kernel,
        out_shape=jax.ShapeDtypeStruct((n, c_out, p_pad), jnp.float32),
        grid=(n, n_sp),
        in_specs=[
            pl.BlockSpec((None, c_out, tm), lambda b, i: (b, 0, i)),
            pl.BlockSpec((c_out, 1), lambda b, i: (0, 0)),
            pl.BlockSpec((c_out, 1), lambda b, i: (0, 0)),
        ],
        out_specs=pl.BlockSpec((None, c_out, tm), lambda b, i: (b, 0, i)),
        compiler_params=pltpu.CompilerParams(dimension_semantics=("parallel", "parallel")),
    )(y, scale, shift)

    # TODO(synk): emit bf16 here if the downstream consumer accepts it (halves output traffic).
    return out[:, :, :howo].reshape(n, c_out, h_out, w_out)


def _reference(x, weight, gamma, beta):
    # bf16-quantize the conv inputs (exactly what the kernel feeds the MXU; accumulation is f32)
    xq = x.astype(jnp.bfloat16).astype(jnp.float32)
    wq = weight.astype(jnp.bfloat16).astype(jnp.float32)
    y = lax.conv_general_dilated(
        xq, wq, window_strides=(2, 2), padding=((3, 3), (3, 3)),
        dimension_numbers=("NCHW", "OIHW", "NCHW"),
        precision=lax.Precision.HIGHEST)
    mean = jnp.mean(y, axis=(0, 2, 3), keepdims=True)
    var = jnp.mean((y - mean) ** 2, axis=(0, 2, 3), keepdims=True)
    yn = (y - mean) * lax.rsqrt(var + EPS)
    yn = yn * gamma.reshape(1, -1, 1, 1) + beta.reshape(1, -1, 1, 1)
    return jnp.maximum(yn, 0.0)


if __name__ == "__main__":
    key = jax.random.PRNGKey(0)
    k_x, k_w, k_g, k_b = jax.random.split(key, 4)

    N, C_IN, H, W = 2, 4, 16, 16
    C_OUT = 16

    x = jax.random.normal(k_x, (N, C_IN, H, W), dtype=jnp.float32)
    weight = jax.random.normal(k_w, (C_OUT, C_IN, 7, 7), dtype=jnp.float32) * 0.1
    gamma = 1.0 + 0.1 * jax.random.normal(k_g, (C_OUT,), dtype=jnp.float32)
    beta = 0.05 * jax.random.normal(k_b, (C_OUT,), dtype=jnp.float32)

    out = resnet_layer0_4band(x, weight, gamma, beta)
    out = jax.block_until_ready(out)

    ref = _reference(x, weight, gamma, beta)
    assert out.shape == (N, C_OUT, H // 2, W // 2)
    max_err = float(jnp.max(jnp.abs(out - ref)))
    assert jnp.allclose(out, ref, atol=1e-3, rtol=1e-3), max_err

    print("KERNEL_OK")
</pallas_src>

<mosaic_0001>
module attributes {stable_mosaic.version = 11 : i64} {
  func.func @_conv_stats_kernel(%arg0: i32, %arg1: i32, %arg2: i32, %arg3: memref<16x256xbf16, #tpu.memory_space<vmem>>, %arg4: memref<1x256x128xbf16, #tpu.memory_space<vmem>>, %arg5: memref<1x16x128xf32, #tpu.memory_space<vmem>>, %arg6: memref<1x1x16x1xf32, #tpu.memory_space<vmem>>, %arg7: memref<1x1x16x1xf32, #tpu.memory_space<vmem>>) attributes {dimension_semantics = [#tpu.dimension_semantics<parallel>, #tpu.dimension_semantics<parallel>, #tpu.dimension_semantics<arbitrary>], iteration_bounds = array<i64: 2, 2, 1>, scalar_prefetch = 0 : i64, scratch_operands = 0 : i64, tpu.core_type = #tpu.core_type<tc>, window_params = [{pipeline_mode = #tpu.pipeline_mode<synchronous>, transform_indices = @transform_0, window_bounds = array<i64: 16, 256>}, {transform_indices = @transform_1, window_bounds = array<i64: 1, 256, 128>}, {transform_indices = @transform_2, window_bounds = array<i64: 1, 16, 128>}, {transform_indices = @transform_3, window_bounds = array<i64: 1, 1, 16, 1>}, {transform_indices = @transform_4, window_bounds = array<i64: 1, 1, 16, 1>}]} {
    %c0 = arith.constant 0 : index
    %c0_0 = arith.constant 0 : index
    %0 = vector.load %arg3[%c0, %c0_0] : memref<16x256xbf16, #tpu.memory_space<vmem>>, vector<16x256xbf16>
    %c0_1 = arith.constant 0 : index
    %c0_2 = arith.constant 0 : index
    %c0_3 = arith.constant 0 : index
    %1 = vector.load %arg4[%c0_1, %c0_2, %c0_3] : memref<1x256x128xbf16, #tpu.memory_space<vmem>>, vector<1x256x128xbf16>
    %2 = vector.shape_cast %1 : vector<1x256x128xbf16> to vector<256x128xbf16>
    %cst = arith.constant dense<0.000000e+00> : vector<16x128xf32>
    %3 = tpu.matmul %0, %2, %cst {dimension_numbers = #tpu.dot_dimension_numbers<[1], [0], [0], [1], [0, 0, 1, 1], [], []>} : vector<16x256xbf16>, vector<256x128xbf16>, vector<16x128xf32> -> vector<16x128xf32>
    %c0_4 = arith.constant 0 : index
    %c0_5 = arith.constant 0 : index
    %c0_6 = arith.constant 0 : index
    %4 = vector.load %arg5[%c0_4, %c0_5, %c0_6] : memref<1x16x128xf32, #tpu.memory_space<vmem>>, vector<1x16x128xf32>
    %5 = vector.shape_cast %4 : vector<1x16x128xf32> to vector<16x128xf32>
    %6 = vector.shape_cast %3 : vector<16x128xf32> to vector<1x16x128xf32>
    tpu.vector_store %arg5[%c0_4, %c0_5, %c0_6], %6 {strides = array<i32>} : memref<1x16x128xf32, #tpu.memory_space<vmem>>, vector<1x16x128xf32>,
    %c0_i32 = arith.constant 0 : i32
    %7 = arith.cmpi eq, %arg2, %c0_i32 : i32
    %8 = arith.extui %7 : i1 to i32
    %c0_i32_7 = arith.constant 0 : i32
    %9 = arith.cmpi ne, %8, %c0_i32_7 : i32
    scf.if %9 {
      %cst_26 = arith.constant 0.000000e+00 : f32
      %27 = vector.broadcast %cst_26 : f32 to vector<16x1xf32>
      %c0_27 = arith.constant 0 : index
      %c0_28 = arith.constant 0 : index
      %c0_29 = arith.constant 0 : index
      %c0_30 = arith.constant 0 : index
      %28 = vector.load %arg6[%c0_27, %c0_28, %c0_29, %c0_30] : memref<1x1x16x1xf32, #tpu.memory_space<vmem>>, vector<1x1x16x1xf32>
      %29 = vector.shape_cast %28 : vector<1x1x16x1xf32> to vector<16x1xf32>
      %30 = vector.shape_cast %27 : vector<16x1xf32> to vector<1x1x16x1xf32>
      tpu.vector_store %arg6[%c0_27, %c0_28, %c0_29, %c0_30], %30 {strides = array<i32>} : memref<1x1x16x1xf32, #tpu.memory_space<vmem>>, vector<1x1x16x1xf32>,
      %cst_31 = arith.constant 0.000000e+00 : f32
      %31 = vector.broadcast %cst_31 : f32 to vector<16x1xf32>
      %c0_32 = arith.constant 0 : index
      %c0_33 = arith.constant 0 : index
      %c0_34 = arith.constant 0 : index
      %c0_35 = arith.constant 0 : index
      %32 = vector.load %arg7[%c0_32, %c0_33, %c0_34, %c0_35] : memref<1x1x16x1xf32, #tpu.memory_space<vmem>>, vector<1x1x16x1xf32>
      %33 = vector.shape_cast %32 : vector<1x1x16x1xf32> to vector<16x1xf32>
      %34 = vector.shape_cast %31 : vector<16x1xf32> to vector<1x1x16x1xf32>
      tpu.vector_store %arg7[%c0_32, %c0_33, %c0_34, %c0_35], %34 {strides = array<i32>} : memref<1x1x16x1xf32, #tpu.memory_space<vmem>>, vector<1x1x16x1xf32>,
    } else {
    }
    %c0_8 = arith.constant 0 : index
    %c0_9 = arith.constant 0 : index
    %c0_10 = arith.constant 0 : index
    %c0_11 = arith.constant 0 : index
    %10 = vector.load %arg6[%c0_8, %c0_9, %c0_10, %c0_11] : memref<1x1x16x1xf32, #tpu.memory_space<vmem>>, vector<1x1x16x1xf32>
    %11 = vector.shape_cast %10 : vector<1x1x16x1xf32> to vector<16x1xf32>
    %cst_12 = arith.constant dense<0.000000e+00> : vector<16xf32>
    %12 = vector.multi_reduction <add>, %3, %cst_12 [1] : vector<16x128xf32> to vector<16xf32>
    %13 = vector.shape_cast %12 : vector<16xf32> to vector<16x1xf32>
    %14 = arith.addf %11, %13 : vector<16x1xf32>
    %c0_13 = arith.constant 0 : index
    %c0_14 = arith.constant 0 : index
    %c0_15 = arith.constant 0 : index
    %c0_16 = arith.constant 0 : index
    %15 = vector.load %arg6[%c0_13, %c0_14, %c0_15, %c0_16] : memref<1x1x16x1xf32, #tpu.memory_space<vmem>>, vector<1x1x16x1xf32>
    %16 = vector.shape_cast %15 : vector<1x1x16x1xf32> to vector<16x1xf32>
    %17 = vector.shape_cast %14 : vector<16x1xf32> to vector<1x1x16x1xf32>
    tpu.vector_store %arg6[%c0_13, %c0_14, %c0_15, %c0_16], %17 {strides = array<i32>} : memref<1x1x16x1xf32, #tpu.memory_space<vmem>>, vector<1x1x16x1xf32>,
    %c0_17 = arith.constant 0 : index
    %c0_18 = arith.constant 0 : index
    %c0_19 = arith.constant 0 : index
    %c0_20 = arith.constant 0 : index
    %18 = vector.load %arg7[%c0_17, %c0_18, %c0_19, %c0_20] : memref<1x1x16x1xf32, #tpu.memory_space<vmem>>, vector<1x1x16x1xf32>
    %19 = vector.shape_cast %18 : vector<1x1x16x1xf32> to vector<16x1xf32>
    %20 = arith.mulf %3, %3 : vector<16x128xf32>
    %cst_21 = arith.constant dense<0.000000e+00> : vector<16xf32>
    %21 = vector.multi_reduction <add>, %20, %cst_21 [1] : vector<16x128xf32> to vector<16xf32>
    %22 = vector.shape_cast %21 : vector<16xf32> to vector<16x1xf32>
    %23 = arith.addf %19, %22 : vector<16x1xf32>
    %c0_22 = arith.constant 0 : index
    %c0_23 = arith.constant 0 : index
    %c0_24 = arith.constant 0 : index
    %c0_25 = arith.constant 0 : index
    %24 = vector.load %arg7[%c0_22, %c0_23, %c0_24, %c0_25] : memref<1x1x16x1xf32, #tpu.memory_space<vmem>>, vector<1x1x16x1xf32>
    %25 = vector.shape_cast %24 : vector<1x1x16x1xf32> to vector<16x1xf32>
    %26 = vector.shape_cast %23 : vector<16x1xf32> to vector<1x1x16x1xf32>
    tpu.vector_store %arg7[%c0_22, %c0_23, %c0_24, %c0_25], %26 {strides = array<i32>} : memref<1x1x16x1xf32, #tpu.memory_space<vmem>>, vector<1x1x16x1xf32>,
    return
  }
  func.func @transform_0(%arg0: i32, %arg1: i32, %arg2: i32) -> (i32, i32) {
    %c0_i32 = arith.constant 0 : i32
    %c0_i32_0 = arith.constant 0 : i32
    %c0_i32_1 = arith.constant 0 : i32
    return %c0_i32, %c0_i32_0 : i32, i32
  }
  func.func @transform_1(%arg0: i32, %arg1: i32, %arg2: i32) -> (i32, i32, i32) {
    %c1_i32 = arith.constant 1 : i32
    %0 = arith.muli %arg1, %c1_i32 : i32
    %1 = arith.addi %0, %arg2 : i32
    %c0_i32 = arith.constant 0 : i32
    %c0_i32_0 = arith.constant 0 : i32
    return %arg0, %c0_i32, %1 : i32, i32, i32
  }
  func.func @transform_2(%arg0: i32, %arg1: i32, %arg2: i32) -> (i32, i32, i32) {
    %c1_i32 = arith.constant 1 : i32
    %0 = arith.muli %arg1, %c1_i32 : i32
    %1 = arith.addi %0, %arg2 : i32
    %c0_i32 = arith.constant 0 : i32
    %c0_i32_0 = arith.constant 0 : i32
    return %arg0, %c0_i32, %1 : i32, i32, i32
  }
  func.func @transform_3(%arg0: i32, %arg1: i32, %arg2: i32) -> (i32, i32, i32, i32) {
    %c0_i32 = arith.constant 0 : i32
    %c0_i32_0 = arith.constant 0 : i32
    %c0_i32_1 = arith.constant 0 : i32
    return %arg0, %arg1, %c0_i32, %c0_i32_0 : i32, i32, i32, i32
  }
  func.func @transform_4(%arg0: i32, %arg1: i32, %arg2: i32) -> (i32, i32, i32, i32) {
    %c0_i32 = arith.constant 0 : i32
    %c0_i32_0 = arith.constant 0 : i32
    %c0_i32_1 = arith.constant 0 : i32
    return %arg0, %arg1, %c0_i32, %c0_i32_0 : i32, i32, i32, i32
  }
}

</mosaic_0001>

<bundles_post_ra>
// kernel: tpu_custom_call.1
= control target key start
LH: loop header
LB: loop body
LE: loop exit
PB: predicated region body
PF: predicated region fallthrough
CT: control target
= control target key end

     0   :  { %s1420_s0 = inlined_call_operand.hbm [shape: bf16[16,256], index: 0, kind: input, shape index: {}]   ;;  %s1421_s1 = inlined_call_operand.hbm [shape: bf16[2,256,256], index: 1, kind: input, shape index: {}]   ;;  %s1422_s2 = inlined_call_operand.hbm [shape: f32[2,16,256], index: 2, kind: output, shape index: {0}]   ;;  %s1423_s3 = inlined_call_operand.vmem [shape: f32[2,2,16,1], index: 3, kind: output, shape index: {1}]   ;;  %s1424_s4 = inlined_call_operand.vmem [shape: f32[2,2,16,1], index: 4, kind: output, shape index: {2}]  }
   0x1   :  { %1435 = sst [smem:[#allocation14_spill]] %s1420_s0 }
   0x2   :  { %10 = vsyncpa [#allocation3], 0 }
   0x3   :  { %11 = vsyncpa [#allocation6], 0 }
   0x4   :  { %13 = vsyncpa [#allocation6 + $0x1], 0 }
   0x5   :  { %14 = vsyncpa [#allocation4], 0 }
   0x6   :  { %16 = vsyncpa [#allocation4 + $0x1], 0  ;;  %s1127_s15 = smov 0   ;;  %s1129_s16 = smov 0  }
   0x7   :  { %s1131_s17 = smov 0   ;;  %s1133_s18 = smov 0  }
   0x8   :  { %s1135_s19 = smov 0   ;;  %s1137_s20 = smov 0  }
   0x9   :  { %s1139_s21 = smov 0   ;;  %s1141_s22 = smov 0  }
   0xa LB: > { %1436 = sst [smem:[#allocation11_spill]] %s1081_s20  ;;  %s750_s23 = sadd.s32 4294967295, %s1089_s22   ;;  %s1089_s22 = sphi %s1141_s22, %s22_s22   ;;  %s1085_s21 = sphi %s1139_s21, %s1464_s21   ;;  %s1081_s20 = sphi %s1137_s20, %s1463_s20   ;;  %s1077_s19 = sphi %s1135_s19, %s1462_s19   ;;  %s1073_s18 = sphi %s1133_s18, %s1457_s18   ;;  %s1069_s17 = sphi %s1131_s17, %s1461_s17   ;;  %s1065_s16 = sphi %s1129_s16, %s1460_s16   ;;  %s1061_s15 = sphi %s1127_s15, %s1459_s15  }
   0xb   : > { %s751_s24 = sadd.s32 4294967294, %s1089_s22   ;;  %p80_p0 = scmp.ne.s32.totalorder %s1069_s17, %s1065_s16 }
   0xc   : > { %p81_p1 = scmp.eq.s32.totalorder %s1089_s22, 0  ;;  %p86_p2 = scmp.ne.s32.totalorder %s1065_s16, %s1061_s15 }
   0xd   : > { %p1175_p3 = scmp.eq.s32.totalorder %s750_s23, 0  ;;  %p114_p4 = scmp.eq.s32.totalorder %s750_s23, 3 }
   0xe   : > { %p1179_p5 = por %p81_p1, %p80_p0  ;;  %p120_p6 = scmp.eq.s32.totalorder %s751_s24, 3 }
   0xf   : > { %s1437_s26 = scalar_select %p1175_p3, 1, 0 }
  0x10   : > { %p1185_p7 = por %p1175_p3, %p86_p2  ;;  %p1189_p8 = por %p114_p4, %p80_p0 }
  0x11   : > { %p1193_p9 = por %p120_p6, %p86_p2  ;;  %p752_p10 = scmp.ge.s32.totalorder %s1089_s22, 1 }
  0x12   : > { %s1439_s28 = scalar_select %p1185_p7, 1, 0 }
  0x13   : > { %s1440_s29 = scalar_select %p1189_p8, 1, 0 }
  0x14   : > { %s1441_s30 = scalar_select %p1193_p9, 1, 0 }
  0x15   : > { %p183_p11 = scmp.lt.s32.totalorder %s1089_s22, 5  ;;  %s1091_s6 = smov [#allocation2]  }
  0x16   : > { %1442 = sst [smem:[#allocation12_spill]] %s1441_s30  ;;  %s195_s7 = sshll.u32 %s1091_s6, 4  ;;  %s196_s7 = int_to_ptr.vmem [resolvable:$true] %s195_s7 }
  0x17   : > { %p1199_p12 = pnand %p752_p10, %p183_p11  ;;  %p834_p0 = scmp.lt.s32.totalorder %s1089_s22, 4 }
  0x18   : > { %s1446_s0 = sld [smem:[#allocation14_spill]] }
  0x19   : > { %s1443_s5 = scalar_select %p1199_p12, 1, 0 }
  0x1a   : > { %p821_p13 = pneg %p1199_p12  ;;  %p1214_p2 = pnand %p834_p0, %p1179_p5 }
  0x1c   : > { %p1208_p1 = pnand %p821_p13, %p1175_p3 }
  0x1d   : > { %s1445_s9 = scalar_select %p1214_p2, 1, 0 }
  0x1e   : > { %s929_s12 = scalar_lea.hbm %s1446_s0, 256  ;;  %p931_p6 = pneg %p1208_p1 }
  0x1f   : > { %p930_p4 = scmp.ne.s32.totalorder %s1446_s0, %s929_s12  ;;  %p936_p13 = scmp.lt.u32.totalorder %s929_s12, %s1446_s0 }
  0x21   : > { %p932_p10 = pnand %p931_p6, %p930_p4 }
  0x23   : > { %p933_p11 = pneg %p932_p10 }
  0x25   : > { %p938_p5 = pnand %p936_p13, %p933_p11 }
  0x27   : > { %941 = shalt.err (!%p938_p5)
}
  0x28   : > { %s942_s27 = scalar_lea.vmem %s196_s7, 256  ;;  %p950_p7 = scmp.lt.s32.totalorder %s196_s7, %s196_s7 }
  0x29   : > { %p943_p0 = scmp.ne.s32.totalorder %s196_s7, %s942_s27  ;;  %p951_p3 = scmp.lt.s32.totalorder %s942_s27, %s942_s27 }
  0x2b   : > { %p945_p9 = pnand %p943_p0, %p931_p6  ;;  %p952_p12 = por %p951_p3, %p950_p7 }
  0x2d   : > { %p946_p8 = pneg %p945_p9 }
  0x2f   : > { %p953_p2 = pnand %p952_p12, %p946_p8 }
  0x31   : > { %956 = shalt.err (!%p953_p2)
}
  0x32   : > { %s1431_s6 = smov 128   ;;  %s1093_s10 = smov 8  }
  0x33   : > { %824 = dma.hbm_to_vmem [thread:$0]  (!%p1208_p1), %s1446_s0, 256, %s196_s7, [#allocation3], %s1431_s6, %s1431_s6, %s1093_s10  }
  0x34   : > { %s37_s13 = sadd.s32 1, %s1081_s20  ;;  %s41_s14 = sadd.s32 1, %s1085_s21 }
  0x35   : > { %p39_p3 = scmp.ge.s32.totalorder %s37_s13, 2  ;;  %s209_s23 = sand.u32 1, %s1069_s17  }
  0x36   : > { %s756_s24 = sshll.u32 %s1085_s21, 6  ;;  %s755_s8 = sshll.u32 %s209_s23, 7 }
  0x37   : > { %s1466_s13 = smov (%p39_p3, %s37_s13), 0  ;;  %s1468_s14 = smov (!%p39_p3, %s41_s14), %s1085_s21 }
  0x38   : > { %1447 = sst [smem:[#allocation13_spill]] %s1466_s13  ;;  %s69_s27 = ssub.s32 %s1081_s20, %s1466_s13 }
  0x39   : > { %p43_p7 = scmp.ge.s32.totalorder %s1468_s14, 2  ;;  %s219_s25 = sadd.s32 %s1081_s20, %s756_s24 }
  0x3a   : > { %s757_s7 = sshll.u32 %s219_s25, 6  ;;  %s213_s10 = scalar_lea.vmem [#allocation5], %s755_s8 }
  0x3b   : > { %s1470_s14 = smov (%p43_p7, %s1468_s14), 0  ;;  %s222_s11 = sshll.u32 %s213_s10, 4  ;;  %s1255_s11 = int_to_ptr.vmem [resolvable:$true] %s222_s11 }
  0x3c   : > { %s68_s12 = ssub.s32 %s1085_s21, %s1470_s14  ;;  %s1253_s30 = scalar_lea.hbm %s1421_s1, %s757_s7 }
  0x3d   : > { %s70_s13 = sor.u32 %s69_s27, %s68_s12  ;;  %s1448_s24 = sadd.s32 1, %s1069_s17 }
  0x3e   : > { %p71_p8 = scmp.eq.s32.totalorder %s70_s13, 0  ;;  %s1262_s25 = scalar_lea.sflag [#allocation6], %s209_s23 }
  0x3f   : > { %s957_s8 = scalar_lea.hbm %s1253_s30, 2048  ;;  %p1449_p12 = scmp.ne.s32.totalorder %s1445_s9, 0 }
  0x40   : > { %s1260_s20 = scalar_select %p71_p8, %s1069_s17, %s1448_s24  }
  0x41   : > { %p958_p9 = scmp.ne.s32.totalorder %s1253_s30, %s957_s8  ;;  %p959_p1 = pneg %p1449_p12 }
  0x42   : > { %s962_s27 = scalar_lea.hbm %s1421_s1, 8192  ;;  %p963_p6 = scmp.lt.u32.totalorder %s1253_s30, %s1421_s1 }
  0x43   : > { %p960_p2 = pnand %p959_p1, %p958_p9  ;;  %p964_p10 = scmp.lt.u32.totalorder %s962_s27, %s957_s8 }
  0x44   : > { %p966_p13 = scmp.lt.u32.totalorder %s957_s8, %s1253_s30 }
  0x45   : > { %p961_p4 = pneg %p960_p2  ;;  %p965_p11 = por %p964_p10, %p963_p6 }
  0x47   : > { %p967_p5 = por %p966_p13, %p965_p11 }
  0x49   : > { %p968_p0 = pnand %p967_p5, %p961_p4 }
  0x4b   : > { %971 = shalt.err (!%p968_p0)
}
  0x4c   : > { %s972_s13 = scalar_lea.vmem %s1255_s11, 2048  ;;  %s1094_s23 = smov [#allocation5]  }
  0x4d   : > { %p973_p3 = scmp.ne.s32.totalorder %s1255_s11, %s972_s13  ;;  %s977_s12 = sshll.u32 %s1094_s23, 4  ;;  %s978_s12 = int_to_ptr.vmem [resolvable:$false] %s977_s12 }
  0x4e   : > { %s979_s24 = scalar_lea.vmem %s978_s12, 4096  ;;  %p980_p9 = scmp.lt.s32.totalorder %s1255_s11, %s978_s12 }
  0x4f   : > { %p975_p7 = pnand %p973_p3, %p959_p1  ;;  %p981_p2 = scmp.lt.s32.totalorder %s979_s24, %s972_s13 }
  0x51   : > { %p976_p8 = pneg %p975_p7  ;;  %p982_p6 = por %p981_p2, %p980_p9 }
  0x53   : > { %p983_p10 = pnand %p982_p6, %p976_p8 }
  0x55   : > { %986 = shalt.err (!%p983_p10)
}
  0x56   : > { %s1095_s8 = smov 64   ;;  %s1096_s0 = smov 4  }
  0x57   : > { %s1450_s6 = smov 128   ;;  %p1451_p1 = scmp.ne.s32.totalorder %s1443_s5, 0 }
  0x58   : > { %828 = dma.hbm_to_vmem [thread:$0]  (!%p1449_p12), %s1253_s30, 2048, %s1255_s11, %s1262_s25, %s1450_s6, %s1095_s8, %s1096_s0  }
  0x59   : > { %234 = sbr.rel (%p1451_p1) target bundleno = 500 (0x1f4), region = 28  ;;  %p1452_p4 = scmp.ne.s32.totalorder (!%p1451_p1), %s1437_s26, 0 }
  0x60   : > { %1048 = dma.done.wait (%p1452_p4), [#allocation3], 256  }
  0x61   : > { %1050 = vsyncadd (%p1452_p4), [#allocation3], 4294967040  ;;  %s1298_s27 = sand.u32 1, %s1065_s16   ;;  %p1453_p12 = scmp.ne.s32.totalorder %s1439_s28, 0 }
  0x62   : > { %s760_s7 = sshll.u32 %s1298_s27, 7  ;;  %s241_s10 = scalar_lea.sflag [#allocation6], %s1298_s27 }
  0x63   : > { %s1302_s9 = scalar_lea.vmem [#allocation5], %s760_s7 }
  0x64   : > { %1052 = dma.done.wait (%p1453_p12), %s241_s10, 2048  }
  0x65   : > { %1054 = vsyncadd (%p1453_p12), %s241_s10, 4294965248  ;;  %v910_v0 = vld [vmem:[%s1302_s9 + $0x40] sm:$0xff]   ;;  %v912_v2 = vld [vmem:[%s1302_s9 + $0x48] sm:$0xff]   ;;  %p289_p11 = scmp.lt.s32.totalorder %s1077_s19, 1  ;;  %p291_p13 = scmp.lt.s32.totalorder %s1073_s18, 1  ;;  %vm495_vm0 = vcmask 7168  }
  0x66   : > { %v911_v1 = vld [vmem:[%s1302_s9] sm:$0xff]   ;;  %791 = vmatprep.subr.bf16.mxu0 %v910_v0  ;;  %v913_v3 = vld [vmem:[%s1302_s9 + $0x8] sm:$0xff]   ;;  %v914_v4 = vld [vmem:[%s1302_s9 + $0x50] sm:$0xff]   ;;  %v1097_v18 = vmov 0.0   ;;  %s761_s24 = sshll.u32 %s1298_s27, 4  ;;  %p1454_p0 = scmp.ne.s32.totalorder %s1440_s29, 0 }
  0x67   : > { %792 = vmatpush3.bf16.msra.mxu0 %v911_v1  ;;  %v915_v5 = vld [vmem:[%s1302_s9 + $0x10] sm:$0xff]   ;;  %v916_v6 = vld [vmem:[%s1302_s9 + $0x58] sm:$0xff]   ;;  %v918_v8 = vld [vmem:[%s1302_s9 + $0x60] sm:$0xff]   ;;  %s290_s26 = scalar_select %p289_p11, %s1077_s19, 1 }
  0x68   : > { %793 = vmatprep.subr.bf16.mxu0 %v912_v2  ;;  %v917_v7 = vld [vmem:[%s1302_s9 + $0x18] sm:$0xff]   ;;  %v919_v9 = vld [vmem:[%s1302_s9 + $0x20] sm:$0xff]   ;;  %v920_v10 = vld [vmem:[%s1302_s9 + $0x68] sm:$0xff]   ;;  %s292_s28 = scalar_select %p291_p13, %s1073_s18, 1 }
  0x69   : > { %v928_v11 = vld [vmem:[#allocation2 + $0x4] ss:$8 sps:$4 sm:$0xff]   ;;  %v921_v12 = vld [vmem:[%s1302_s9 + $0x28] sm:$0xff]   ;;  %v926_v17 = vld [vmem:[#allocation2] ss:$8 sps:$4 sm:$0xff]   ;;  %s763_s30 = sshll.u32 %s290_s26, 2 }
  0x6a   : > { %480 = vmatprep.mubr.bf16.mxu0 %v928_v11  ;;  %v922_v13 = vld [vmem:[%s1302_s9 + $0x70] sm:$0xff]   ;;  %v924_v15 = vld [vmem:[%s1302_s9 + $0x78] sm:$0xff]   ;;  %s762_s5 = sshll.u32 %s292_s28, 1  ;;  %s264_s8 = scalar_lea.vmem [#allocation7], %s761_s24 }
  0x6b   : > { %794 = vmatpush3.bf16.msra.mxu0 %v913_v3  ;;  %v923_v14 = vld [vmem:[%s1302_s9 + $0x30] sm:$0xff]   ;;  %v925_v16 = vld [vmem:[%s1302_s9 + $0x38] sm:$0xff]   ;;  %s295_s11 = sadd.s32 %s763_s30, %s762_s5  ;;  %s557_s10 = sshll.u32 %s264_s8, 4  ;;  %s1349_s10 = int_to_ptr.vmem [resolvable:$true] %s557_s10 }
  0x6c   : > { %795 = vmatprep.subr.bf16.mxu0 %v914_v4  ;;  %s764_s25 = sshll.u32 %s295_s11, 3  ;;  %s787_s9 = sshll.u32 %s1077_s19, 2 }
  0x6d   : > { %s1331_s12 = scalar_lea.vmem %s1423_s3, %s764_s25  ;;  %s1341_s7 = scalar_lea.vmem %s1424_s4, %s764_s25 }
  0x6e   : > { %496 = vst.msk [vmem:[%s1331_s12] sm:$0xff] %vm495_vm0, %v1097_v18  ;;  %497 = vst.msk [vmem:[%s1331_s12 + $0x8] sm:$0xff] %vm495_vm0, %v1097_v18  ;;  %s554_s26 = sadd.s32 %s1073_s18, %s787_s9  ;;  %s524_s25 = scalar_lea.sflag [#allocation4], %s1298_s27 }
  0x6f   : > { %796 = vmatpush3.bf16.msra.mxu0 %v915_v5  ;;  %498 = vst.msk [vmem:[%s1341_s7] sm:$0xff] %vm495_vm0, %v1097_v18  ;;  %499 = vst.msk [vmem:[%s1341_s7 + $0x8] sm:$0xff] %vm495_vm0, %v1097_v18  ;;  %s788_s28 = sshll.u32 %s554_s26, 7  ;;  %s987_s13 = scalar_lea.vmem %s1349_s10, 256 }
  0x70   : > { %797 = vmatprep.subr.bf16.mxu0 %v916_v6  ;;  %s1354_s11 = scalar_lea.hbm %s1422_s2, %s788_s28  ;;  %p988_p5 = scmp.ne.s32.totalorder %s1349_s10, %s987_s13 }
  0x71   : > { %s1098_s23 = smov [#allocation7]  }
  0x72   : > { %p989_p3 = pnand %p988_p5, %p1454_p0  ;;  %s991_s19 = sshll.u32 %s1098_s23, 4  ;;  %s992_s19 = int_to_ptr.vmem [resolvable:$false] %s991_s19 }
  0x73   : > { %798 = vmatpush3.bf16.msra.mxu0 %v917_v7  ;;  %s993_s18 = scalar_lea.vmem %s992_s19, 512  ;;  %p994_p8 = scmp.lt.s32.totalorder %s1349_s10, %s992_s19 }
  0x74   : > { %799 = vmatprep.subr.bf16.mxu0 %v918_v8  ;;  %p990_p7 = pneg %p989_p3  ;;  %p995_p9 = scmp.lt.s32.totalorder %s993_s18, %s987_s13 }
  0x76   : > { %p996_p2 = por %p995_p9, %p994_p8 }
  0x77   : > { %800 = vmatpush3.bf16.msra.mxu0 %v919_v9 }
  0x78   : > { %801 = vmatprep.subr.bf16.mxu0 %v920_v10  ;;  %p997_p6 = pnand %p996_p2, %p990_p7 }
  0x7b   : > { %802 = vmatpush3.bf16.msra.mxu0 %v921_v12 }
  0x7c   : > { %803 = vmatprep.subr.bf16.mxu0 %v922_v13 }
  0x7f   : > { %804 = vmatpush3.bf16.msra.mxu0 %v923_v14 }
  0x80   : > { %805 = vmatprep.subr.bf16.mxu0 %v924_v15 }
  0x83   : > { %806 = vmatpush3.bf16.msra.mxu0 %v925_v16 }
  0x86   : > { %481 = vmatmul.mubr.bf16.vlgmr.msra.gmra.mrb[0].mxu0 %v926_v17 }
 0x159   : > { %v807_v19 = vpop.f32.mrb[0].mxu0 }
 0x15a   : > { %v808_v20 = vpop.f32.mrb[1].mxu0 }
 0x15b   : > { %v809_v21 = vadd.f32 %v808_v20, %v807_v19  ;;  %v810_v22 = vpop.f32.mrb[2].mxu0 }
 0x15c   : > { %v811_v23 = vpop.f32.mrb[3].mxu0 }
 0x15d   : > { %489 = vst [vmem:[%s264_s8] sm:$0xff] %v809_v21  ;;  %v812_v24 = vadd.f32 %v811_v23, %v810_v22  ;;  %502 = vadd.xlane.f32.xlu0 %v809_v21  ;;  %v513_v25 = vmul.f32 %v809_v21, %v809_v21 }
 0x15f   : > { %490 = vst [vmem:[%s264_s8 + $0x8] sm:$0xff] %v812_v24  ;;  %515 = vadd.xlane.f32.xlu1 %v513_v25  ;;  %v514_v26 = vmul.f32 %v812_v24, %v812_v24 }
 0x161   : > { %504 = vadd.xlane.f32.xlu0 %v812_v24 }
 0x163   : > { %517 = vadd.xlane.f32.xlu1 %v514_v26 }
 0x164   : > { %1000 = shalt.err (!%p997_p6)
}
 0x165   : > { %s1001_s24 = scalar_lea.hbm %s1354_s11, 256  ;;  %s1005_s6 = scalar_lea.hbm %s1422_s2, 1024 }
 0x166   : > { %p1002_p10 = scmp.ne.s32.totalorder %s1354_s11, %s1001_s24  ;;  %p1006_p12 = scmp.lt.u32.totalorder %s1354_s11, %s1422_s2 }
 0x167   : > { %p1007_p11 = scmp.lt.u32.totalorder %s1005_s6, %s1001_s24  ;;  %p1009_p5 = scmp.lt.u32.totalorder %s1001_s24, %s1354_s11 }
 0x168   : > { %p1003_p1 = pnand %p1002_p10, %p1454_p0 }
 0x169   : > { %p1008_p13 = por %p1007_p11, %p1006_p12 }
 0x16a   : > { %p1004_p4 = pneg %p1003_p1 }
 0x16b   : > { %p1010_p3 = por %p1009_p5, %p1008_p13 }
 0x16d   : > { %p1011_p7 = pnand %p1010_p3, %p1004_p4 }
 0x16f   : > { %1014 = shalt.err (!%p1011_p7)
}
 0x170   : > { %s1099_s28 = smov 128   ;;  %s1100_s30 = smov 256   ;;  %v500_v27 = vld [vmem:[%s1331_s12] sm:$0xff]  ;;  %v501_v32 = vld [vmem:[%s1331_s12 + $0x8] sm:$0xff] }
 0x171   : > { %s1101_s5 = smov 8   ;;  %v511_v29 = vld [vmem:[%s1341_s7] sm:$0xff]  ;;  %v512_v35 = vld [vmem:[%s1341_s7 + $0x8] sm:$0xff] }
 0x172   : > { %819 = dma.vmem_to_hbm [thread:$0]  (%p1454_p0), %s1349_s10, 256, %s1354_s11, %s524_s25, %s1099_s28, %s1100_s30, %s1101_s5  }
 0x1ea   : > { %v503_v28 = vpop.xlane.xlu0 %502 }
 0x1eb   : > { %v506_v30 = vadd.f32 %v503_v28, %v500_v27 }
 0x1ec   : > { %v516_v31 = vpop.xlane.xlu1 %515 }
 0x1ed   : > { %509 = vst.msk [vmem:[%s1331_s12] sm:$0xff] %vm495_vm0, %v506_v30  ;;  %v519_v33 = vadd.f32 %v516_v31, %v511_v29 }
 0x1ee   : > { %v505_v34 = vpop.xlane.xlu0 %504 }
 0x1ef   : > { %521 = vst.msk [vmem:[%s1341_s7] sm:$0xff] %vm495_vm0, %v519_v33  ;;  %v507_v36 = vadd.f32 %v505_v34, %v501_v32 }
 0x1f0   : > { %v518_v37 = vpop.xlane.xlu1 %517 }
 0x1f1   : > { %510 = vst.msk [vmem:[%s1331_s12 + $0x8] sm:$0xff] %vm495_vm0, %v507_v36  ;;  %v520_v38 = vadd.f32 %v518_v37, %v512_v35 }
 0x1f3   : > { %522 = vst.msk [vmem:[%s1341_s7 + $0x8] sm:$0xff] %vm495_vm0, %v520_v38 }
 0x1f4 PF: > { %s1455_s29 = sld [smem:[#allocation12_spill]]  ;;  %p836_p0 = scmp.ge.s32.totalorder %s1089_s22, 2 }
 0x1f5   : > { %s578_s27 = sand.u32 1, %s1061_s15  }
 0x1f6   : > { %s579_s10 = scalar_lea.sflag [#allocation4], %s578_s27 }
 0x1fa   : > { %p1456_p8 = scmp.ne.s32.totalorder %s1455_s29, 0 }
 0x1fc   : > { %p830_p9 = pnand %p836_p0, %p1456_p8 }
 0x1fe   : > { %1056 = dma.done.wait (!%p830_p9), %s579_s10, 256  }
 0x1ff   : > { %1058 = vsyncadd (!%p830_p9), %s579_s10, 4294967040  ;;  %s22_s22 = sadd.s32 1, %s1089_s22   ;;  %s1457_s18 = sld [smem:[#allocation11_spill]] }
 0x200   : > { %p19_p2 = scmp.ge.s32.totalorder %s22_s22, 6   ;;  %s1458_s12 = sld [smem:[#allocation13_spill]] }
 0x201   : > { %s1459_s15 = smov %s1065_s16  ;;  %s1460_s16 = smov %s1069_s17 }
 0x202   : > { %s1461_s17 = smov %s1260_s20  ;;  %s1462_s19 = smov %s1085_s21 }
 0x203   : > { %s1464_s21 = smov %s1470_s14  ;;  %21 = sbr.rel (!%p19_p2) target bundleno = 10 (0xa), region = 106 }
 0x206   : > { %s1463_s20 = smov %s1458_s12 }
 0x20a   :  { %608 = vsyncpa [#allocation3], 1 }
 0x20b   :  { %610 = vsyncpa [#allocation3 + $0x1], 1 }
 0x20c   :  { %611 = vsyncpa [#allocation6], 1 }
 0x20d   :  { %613 = vsyncpa [#allocation6 + $0x1], 1 }
 0x20e   :  { %614 = vsyncpa [#allocation4], 1 }
 0x20f   :  { %616 = vsyncpa [#allocation4 + $0x1], 1 }

</bundles_post_ra>
